<compile_context>
chip_gen: v6e
topology: v6e:2x2x1
jax: 0.10.0
libtpu: 0.0.40
codegen_flags: <defaults>
</compile_context>

<pallas_src>
from functools import partial

import jax
import jax.numpy as jnp
from jax.experimental import pallas as pl
from jax.experimental.pallas import tpu as pltpu


def attention_block_kernel(x_ref, sig_ref,
                           w_gate_ref, b_gate_ref,
                           w_att_ref, b_att_ref,
                           out_ref, xs_ref, *, cin, csig):
    x = x_ref[0]                                   # (Cin,  TP) in input dtype
    sig = sig_ref[0]                               # (Csig, TP)

    # Assemble both tiles into one (Cin+Csig, TP) VMEM scratch so the two folded
    # conv1x1+BN gates become a single MXU matmul (fused W_in | W_sig weights).
    xs_ref[0:cin, :] = x.astype(jnp.float32)
    xs_ref[cin:cin + csig, :] = sig.astype(jnp.float32)
    xs = xs_ref[...].astype(jnp.bfloat16)          # bf16 operand, f32 accumulate

    h = jnp.dot(w_gate_ref[...], xs, preferred_element_type=jnp.float32)  # (Catt, TP)
    h = jnp.maximum(h + b_gate_ref[...], 0.0)      # pre-added gate biases + ReLU

    # attention: Catt -> 1 projection on VPU/XLU (avoid degenerate 1-lane MXU matmul)
    logits = jnp.sum(h * w_att_ref[...], axis=0, keepdims=True) + b_att_ref[...]
    attn = jax.nn.sigmoid(logits)                  # (1, TP)

    # gate the skip connection (broadcast over channel sublanes), store in input dtype
    out_ref[0] = (x.astype(jnp.float32) * attn).astype(out_ref.dtype)


def fold_conv1x1_bn(w, b, gamma, beta, mean, var, eps=1e-5):
    """Fold Conv2d(k=1) weight (Cout, Cin) + bias (Cout,) with BatchNorm2d running
    stats into an effective weight (Cout, Cin) and bias (Cout,) for W @ x."""
    scale = gamma / jnp.sqrt(var + eps)              # (Cout,)
    w_eff = w * scale[:, None]                       # (Cout, Cin)
    b_eff = (b - mean) * scale + beta                # (Cout,)
    return w_eff.astype(jnp.float32), b_eff.astype(jnp.float32)


def _pick_tile_p(hw, cin, csig, itemsize, *, vmem_budget=12 << 20, hard_cap=65536):
    """Pixel-tile size: multiple of 128, >=2 grid steps along the pixel axis when
    possible, and bounded so the double-buffered blocks + scratch stay well under
    VMEM (safe even on v7x's 64 MiB). cdiv grid handles the ragged last block."""
    if hw < 256:
        return hw                                    # full axis (always legal)
    # bytes per pixel: double-buffered x, sig, out blocks + f32 assembly scratch
    per_px = 2 * (2 * cin + csig) * itemsize + (cin + csig) * 4
    budget_cap = max(128, (vmem_budget // per_px) // 128 * 128)
    half = max(128, ((hw + 1) // 2) // 128 * 128)    # keeps >= 2 pixel steps
    return int(min(hard_cap, budget_cap, half))


def attention_block(x_nchw, sig_nchw, params, *, tile_p=None):
    """x_nchw: (N, Cin, H, W), sig_nchw: (N, Csig, H, W) -> (N, Cin, H, W)."""
    N, Cin, H, W = x_nchw.shape
    _, Csig, _, _ = sig_nchw.shape
    HW = H * W
    dtype = x_nchw.dtype

    w_in, b_in = fold_conv1x1_bn(params["w_in"], params["b_in"],
                                 params["bn_in_g"], params["bn_in_b"],
                                 params["bn_in_m"], params["bn_in_v"])
    w_sig, b_sig = fold_conv1x1_bn(params["w_sig"], params["b_sig"],
                                   params["bn_sig_g"], params["bn_sig_b"],
                                   params["bn_sig_m"], params["bn_sig_v"])
    w_att, b_att = fold_conv1x1_bn(params["w_att"], params["b_att"],
                                   params["bn_att_g"], params["bn_att_b"],
                                   params["bn_att_m"], params["bn_att_v"])
    Catt = w_in.shape[0]

    # Fuse the two gate matmuls: W_gate = [W_in | W_sig], bf16 for the MXU.
    w_gate = jnp.concatenate([w_in, w_sig], axis=1).astype(jnp.bfloat16)  # (Catt, Cin+Csig)
    b_gate = (b_in + b_sig)[:, None]                 # (Catt, 1) pre-added biases (f32)
    w_att_col = w_att.T                              # (Catt, 1) column for VPU MAC
    b_att_2d = b_att[:, None]                        # (1, 1)

    # NCHW -> (N, C, H*W): pure reshape, no transpose, no dtype cast (native HBM path).
    x_flat = x_nchw.reshape(N, Cin, HW)
    sig_flat = sig_nchw.reshape(N, Csig, HW)

    if tile_p is None:
        tile_p = _pick_tile_p(HW, Cin, Csig, jnp.dtype(dtype).itemsize)
    num_p = pl.cdiv(HW, tile_p)
    grid = (N, num_p)

    out_flat = pl.pallas_call(
        partial(attention_block_kernel, cin=Cin, csig=Csig),
        out_shape=jax.ShapeDtypeStruct((N, Cin, HW), dtype),
        grid_spec=pltpu.PrefetchScalarGridSpec(
            num_scalar_prefetch=0,
            grid=grid,
            in_specs=[
                pl.BlockSpec((1, Cin, tile_p), lambda n, p: (n, 0, p)),      # x tile
                pl.BlockSpec((1, Csig, tile_p), lambda n, p: (n, 0, p)),     # signal tile
                pl.BlockSpec((Catt, Cin + Csig), lambda n, p: (0, 0)),       # fused W_gate (bf16)
                pl.BlockSpec((Catt, 1), lambda n, p: (0, 0)),                # folded b_in+b_sig
                pl.BlockSpec((Catt, 1), lambda n, p: (0, 0)),                # folded w_att
                pl.BlockSpec((1, 1), lambda n, p: (0, 0)),                   # folded b_att
            ],
            out_specs=pl.BlockSpec((1, Cin, tile_p), lambda n, p: (n, 0, p)),
            scratch_shapes=[pltpu.VMEM((Cin + Csig, tile_p), jnp.float32)],  # assembly scratch
        ),
        compiler_params=pltpu.CompilerParams(
            dimension_semantics=("parallel", "parallel")),
    )(x_flat, sig_flat, w_gate, b_gate, w_att_col, b_att_2d)

    return out_flat.reshape(N, Cin, H, W)


def reference_attention_block(x_nchw, sig_nchw, params):
    """Pure-JAX f32 reference (same BN-eval semantics) for verification."""
    def conv_bn(z, w, b, g, be, m, v, eps=1e-5):
        y = jnp.einsum("nchw,oc->nohw", z, w) + b[None, :, None, None]
        return (y - m[None, :, None, None]) / jnp.sqrt(v[None, :, None, None] + eps) \
               * g[None, :, None, None] + be[None, :, None, None]

    h_in = conv_bn(x_nchw, params["w_in"], params["b_in"],
                   params["bn_in_g"], params["bn_in_b"],
                   params["bn_in_m"], params["bn_in_v"])
    h_sig = conv_bn(sig_nchw, params["w_sig"], params["b_sig"],
                    params["bn_sig_g"], params["bn_sig_b"],
                    params["bn_sig_m"], params["bn_sig_v"])
    h = jnp.maximum(h_in + h_sig, 0.0)
    a = conv_bn(h, params["w_att"], params["b_att"],
                params["bn_att_g"], params["bn_att_b"],
                params["bn_att_m"], params["bn_att_v"])
    return x_nchw * jax.nn.sigmoid(a)


def make_params(key, input_channels, signal_channels, attention_channels):
    ks = jax.random.split(key, 12)
    f32 = jnp.float32
    return {
        # input_gate conv (Cout=Catt, Cin=input_channels), kernel_size=1
        "w_in": 0.3 * jax.random.normal(ks[0], (attention_channels, input_channels), f32),
        "b_in": 0.1 * jax.random.normal(ks[1], (attention_channels,), f32),
        "bn_in_g": 1.0 + 0.1 * jax.random.normal(ks[2], (attention_channels,), f32),
        "bn_in_b": 0.05 * jax.random.normal(ks[3], (attention_channels,), f32),
        "bn_in_m": 0.02 * jax.random.normal(ks[4], (attention_channels,), f32),
        "bn_in_v": 1.0 + 0.1 * jax.random.uniform(ks[5], (attention_channels,), f32),
        # signal_gate conv (Cout=Catt, Cin=signal_channels)
        "w_sig": 0.3 * jax.random.normal(ks[6], (attention_channels, signal_channels), f32),
        "b_sig": 0.1 * jax.random.normal(ks[7], (attention_channels,), f32),
        "bn_sig_g": 1.0 + 0.1 * jax.random.normal(ks[8], (attention_channels,), f32),
        "bn_sig_b": 0.05 * jax.random.normal(ks[9], (attention_channels,), f32),
        "bn_sig_m": jnp.zeros((attention_channels,), f32),
        "bn_sig_v": jnp.ones((attention_channels,), f32),
        # attention conv (Cout=1, Cin=attention_channels)
        "w_att": 0.3 * jax.random.normal(ks[10], (1, attention_channels), f32),
        "b_att": 0.1 * jax.random.normal(ks[11], (1,), f32),
        "bn_att_g": jnp.ones((1,), f32),
        "bn_att_b": jnp.zeros((1,), f32),
        "bn_att_m": jnp.zeros((1,), f32),
        "bn_att_v": jnp.ones((1,), f32),
    }


if __name__ == "__main__":
    key = jax.random.PRNGKey(0)
    N, H, W = 2, 16, 16
    input_channels, signal_channels, attention_channels = 4, 6, 8

    k_x, k_s, k_p = jax.random.split(key, 3)
    x = jax.random.normal(k_x, (N, input_channels, H, W), jnp.float32)
    signal = jax.random.normal(k_s, (N, signal_channels, H, W), jnp.float32)
    params = make_params(k_p, input_channels, signal_channels, attention_channels)

    out = jax.block_until_ready(attention_block(x, signal, params))

    ref = reference_attention_block(x, signal, params)
    assert out.shape == (N, input_channels, H, W)
    assert out.dtype == x.dtype
    # bf16 matmul operands on the gate path -> compare at loosened tolerance
    max_err = float(jnp.max(jnp.abs(out - ref)))
    assert jnp.allclose(out, ref, atol=2e-2, rtol=2e-2), \
        f"mismatch vs. reference (max abs err {max_err})"

    print("KERNEL_OK")
</pallas_src>

<mosaic_0001>
module attributes {stable_mosaic.version = 11 : i64} {
  func.func @attention_block_kernel(%arg0: i32, %arg1: i32, %arg2: memref<1x4x128xf32, #tpu.memory_space<vmem>>, %arg3: memref<1x6x128xf32, #tpu.memory_space<vmem>>, %arg4: memref<8x10xbf16, #tpu.memory_space<vmem>>, %arg5: memref<8x1xf32, #tpu.memory_space<vmem>>, %arg6: memref<8x1xf32, #tpu.memory_space<vmem>>, %arg7: memref<1x1xf32, #tpu.memory_space<vmem>>, %arg8: memref<1x4x128xf32, #tpu.memory_space<vmem>>, %arg9: memref<10x128xf32, #tpu.memory_space<vmem>>) attributes {dimension_semantics = [#tpu.dimension_semantics<parallel>, #tpu.dimension_semantics<parallel>], iteration_bounds = array<i64: 2, 2>, scalar_prefetch = 0 : i64, scratch_operands = 1 : i64, tpu.core_type = #tpu.core_type<tc>, window_params = [{transform_indices = @transform_0, window_bounds = array<i64: 1, 4, 128>}, {transform_indices = @transform_1, window_bounds = array<i64: 1, 6, 128>}, {pipeline_mode = #tpu.pipeline_mode<synchronous>, transform_indices = @transform_2, window_bounds = array<i64: 8, 10>}, {pipeline_mode = #tpu.pipeline_mode<synchronous>, transform_indices = @transform_3, window_bounds = array<i64: 8, 1>}, {pipeline_mode = #tpu.pipeline_mode<synchronous>, transform_indices = @transform_4, window_bounds = array<i64: 8, 1>}, {pipeline_mode = #tpu.pipeline_mode<synchronous>, transform_indices = @transform_5, window_bounds = array<i64: 1, 1>}, {transform_indices = @transform_6, window_bounds = array<i64: 1, 4, 128>}]} {
    %c0 = arith.constant 0 : index
    %c0_0 = arith.constant 0 : index
    %c0_1 = arith.constant 0 : index
    %0 = vector.load %arg2[%c0, %c0_0, %c0_1] : memref<1x4x128xf32, #tpu.memory_space<vmem>>, vector<1x4x128xf32>
    %1 = vector.shape_cast %0 : vector<1x4x128xf32> to vector<4x128xf32>
    %c0_2 = arith.constant 0 : index
    %c0_3 = arith.constant 0 : index
    %c0_4 = arith.constant 0 : index
    %2 = vector.load %arg3[%c0_2, %c0_3, %c0_4] : memref<1x6x128xf32, #tpu.memory_space<vmem>>, vector<1x6x128xf32>
    %3 = vector.shape_cast %2 : vector<1x6x128xf32> to vector<6x128xf32>
    %c0_5 = arith.constant 0 : index
    %c0_6 = arith.constant 0 : index
    %4 = vector.load %arg9[%c0_5, %c0_6] : memref<10x128xf32, #tpu.memory_space<vmem>>, vector<4x128xf32>
    tpu.vector_store %arg9[%c0_5, %c0_6], %1 {strides = array<i32>} : memref<10x128xf32, #tpu.memory_space<vmem>>, vector<4x128xf32>,
    %c4 = arith.constant 4 : index
    %c0_7 = arith.constant 0 : index
    %5 = vector.load %arg9[%c4, %c0_7] : memref<10x128xf32, #tpu.memory_space<vmem>>, vector<6x128xf32>
    tpu.vector_store %arg9[%c4, %c0_7], %3 {strides = array<i32>} : memref<10x128xf32, #tpu.memory_space<vmem>>, vector<6x128xf32>,
    %c0_8 = arith.constant 0 : index
    %c0_9 = arith.constant 0 : index
    %6 = vector.load %arg9[%c0_8, %c0_9] : memref<10x128xf32, #tpu.memory_space<vmem>>, vector<10x128xf32>
    %7 = arith.truncf %6 : vector<10x128xf32> to vector<10x128xbf16>
    %c0_10 = arith.constant 0 : index
    %c0_11 = arith.constant 0 : index
    %8 = vector.load %arg4[%c0_10, %c0_11] : memref<8x10xbf16, #tpu.memory_space<vmem>>, vector<8x10xbf16>
    %cst = arith.constant dense<0.000000e+00> : vector<8x128xf32>
    %9 = tpu.matmul %8, %7, %cst {dimension_numbers = #tpu.dot_dimension_numbers<[1], [0], [0], [1], [0, 0, 1, 1], [], []>} : vector<8x10xbf16>, vector<10x128xbf16>, vector<8x128xf32> -> vector<8x128xf32>
    %c0_12 = arith.constant 0 : index
    %c0_13 = arith.constant 0 : index
    %10 = vector.load %arg5[%c0_12, %c0_13] : memref<8x1xf32, #tpu.memory_space<vmem>>, vector<8x1xf32>
    %11 = vector.broadcast %10 : vector<8x1xf32> to vector<8x128xf32>
    %12 = arith.addf %9, %11 : vector<8x128xf32>
    %cst_14 = arith.constant 0.000000e+00 : f32
    %13 = vector.broadcast %cst_14 : f32 to vector<8x128xf32>
    %14 = arith.maximumf %12, %13 : vector<8x128xf32>
    %c0_15 = arith.constant 0 : index
    %c0_16 = arith.constant 0 : index
    %15 = vector.load %arg6[%c0_15, %c0_16] : memref<8x1xf32, #tpu.memory_space<vmem>>, vector<8x1xf32>
    %16 = vector.broadcast %15 : vector<8x1xf32> to vector<8x128xf32>
    %17 = arith.mulf %14, %16 : vector<8x128xf32>
    %cst_17 = arith.constant dense<0.000000e+00> : vector<128xf32>
    %18 = vector.multi_reduction <add>, %17, %cst_17 [0] : vector<8x128xf32> to vector<128xf32>
    %19 = vector.shape_cast %18 : vector<128xf32> to vector<1x128xf32>
    %c0_18 = arith.constant 0 : index
    %c0_19 = arith.constant 0 : index
    %20 = vector.load %arg7[%c0_18, %c0_19] : memref<1x1xf32, #tpu.memory_space<vmem>>, vector<1x1xf32>
    %21 = vector.broadcast %20 : vector<1x1xf32> to vector<1x128xf32>
    %22 = arith.addf %19, %21 : vector<1x128xf32>
    %23 = arith.negf %22 : vector<1x128xf32>
    %24 = math.exp %23 : vector<1x128xf32>
    %cst_20 = arith.constant 1.000000e+00 : f32
    %25 = vector.broadcast %cst_20 : f32 to vector<1x128xf32>
    %26 = arith.addf %25, %24 : vector<1x128xf32>
    %27 = arith.divf %25, %26 : vector<1x128xf32>
    %28 = vector.broadcast %27 : vector<1x128xf32> to vector<4x128xf32>
    %29 = arith.mulf %1, %28 : vector<4x128xf32>
    %c0_21 = arith.constant 0 : index
    %c0_22 = arith.constant 0 : index
    %c0_23 = arith.constant 0 : index
    %30 = vector.load %arg8[%c0_21, %c0_22, %c0_23] : memref<1x4x128xf32, #tpu.memory_space<vmem>>, vector<1x4x128xf32>
    %31 = vector.shape_cast %30 : vector<1x4x128xf32> to vector<4x128xf32>
    %32 = vector.shape_cast %29 : vector<4x128xf32> to vector<1x4x128xf32>
    tpu.vector_store %arg8[%c0_21, %c0_22, %c0_23], %32 {strides = array<i32>} : memref<1x4x128xf32, #tpu.memory_space<vmem>>, vector<1x4x128xf32>,
    return
  }
  func.func @transform_0(%arg0: i32, %arg1: i32) -> (i32, i32, i32) {
    %c0_i32 = arith.constant 0 : i32
    %c0_i32_0 = arith.constant 0 : i32
    return %arg0, %c0_i32, %arg1 : i32, i32, i32
  }
  func.func @transform_1(%arg0: i32, %arg1: i32) -> (i32, i32, i32) {
    %c0_i32 = arith.constant 0 : i32
    %c0_i32_0 = arith.constant 0 : i32
    return %arg0, %c0_i32, %arg1 : i32, i32, i32
  }
  func.func @transform_2(%arg0: i32, %arg1: i32) -> (i32, i32) {
    %c0_i32 = arith.constant 0 : i32
    %c0_i32_0 = arith.constant 0 : i32
    %c0_i32_1 = arith.constant 0 : i32
    return %c0_i32, %c0_i32_0 : i32, i32
  }
  func.func @transform_3(%arg0: i32, %arg1: i32) -> (i32, i32) {
    %c0_i32 = arith.constant 0 : i32
    %c0_i32_0 = arith.constant 0 : i32
    %c0_i32_1 = arith.constant 0 : i32
    return %c0_i32, %c0_i32_0 : i32, i32
  }
  func.func @transform_4(%arg0: i32, %arg1: i32) -> (i32, i32) {
    %c0_i32 = arith.constant 0 : i32
    %c0_i32_0 = arith.constant 0 : i32
    %c0_i32_1 = arith.constant 0 : i32
    return %c0_i32, %c0_i32_0 : i32, i32
  }
  func.func @transform_5(%arg0: i32, %arg1: i32) -> (i32, i32) {
    %c0_i32 = arith.constant 0 : i32
    %c0_i32_0 = arith.constant 0 : i32
    %c0_i32_1 = arith.constant 0 : i32
    return %c0_i32, %c0_i32_0 : i32, i32
  }
  func.func @transform_6(%arg0: i32, %arg1: i32) -> (i32, i32, i32) {
    %c0_i32 = arith.constant 0 : i32
    %c0_i32_0 = arith.constant 0 : i32
    return %arg0, %c0_i32, %arg1 : i32, i32, i32
  }
}

</mosaic_0001>

<bundles_post_ra>
// kernel: tpu_custom_call.1
= control target key start
LH: loop header
LB: loop body
LE: loop exit
PB: predicated region body
PF: predicated region fallthrough
CT: control target
= control target key end

     0   :  { %s893_s0 = inlined_call_operand.vmem [shape: f32[2,4,256], index: 0, kind: input, shape index: {}]   ;;  %s894_s1 = inlined_call_operand.vmem [shape: f32[2,6,256], index: 1, kind: input, shape index: {}]   ;;  %s895_s2 = inlined_call_operand.vmem [shape: bf16[8,10], index: 2, kind: input, shape index: {}]   ;;  %s896_s3 = inlined_call_operand.vmem [shape: f32[8,1], index: 3, kind: input, shape index: {}]   ;;  %s897_s4 = inlined_call_operand.vmem [shape: f32[8,1], index: 4, kind: input, shape index: {}]   ;;  %s898_s5 = inlined_call_operand.<no memory space> [shape: f32[1,1], index: 5, kind: input, shape index: {}]   ;;  %s899_s6 = inlined_call_operand.hbm [shape: f32[2,4,256], index: 6, kind: output, shape index: {}]  }
   0x1   :  { %901 = sst [smem:[#allocation8_spill]] %s896_s3  ;;  %v11_v0 = vstv %s898_s5 }
   0x2   :  { %12 = vst [vmem:[#allocation3] sm:$0x1] %v11_v0 }
   0x3   :  { %13 = vsyncpa [#allocation5], 0 }
   0x4   :  { %15 = vsyncpa [#allocation5 + $0x1], 0  ;;  %s757_s23 = smov 0   ;;  %s759_s24 = smov 0  }
   0x5   :  { %s761_s25 = smov 0   ;;  %s763_s26 = smov 0  }
   0x6   :  { %s765_s27 = smov 0   ;;  %s767_s28 = smov 0  }
   0x7   :  { %s769_s29 = smov 0   ;;  %s771_s30 = smov 0  }
   0x8 LB: > { %s516_s5 = sadd.s32 4294967295, %s713_s30   ;;  %s517_s7 = sadd.s32 4294967294, %s713_s30   ;;  %s713_s30 = sphi %s771_s30, %s21_s30   ;;  %s709_s29 = sphi %s769_s29, %s913_s29   ;;  %s705_s28 = sphi %s767_s28, %s912_s28   ;;  %s701_s27 = sphi %s765_s27, %s911_s27   ;;  %s697_s26 = sphi %s763_s26, %s910_s26   ;;  %s693_s25 = sphi %s761_s25, %s909_s25   ;;  %s689_s24 = sphi %s759_s24, %s908_s24   ;;  %s685_s23 = sphi %s757_s23, %s907_s23  }
   0x9   : > { %s30_s8 = sadd.s32 1, %s705_s28  ;;  %s33_s9 = sadd.s32 1, %s709_s29 }
   0xa   : > { %p31_p0 = scmp.ge.s32.totalorder %s30_s8, 2  ;;  %p192_p1 = scmp.ne.s32.totalorder %s693_s25, %s689_s24 }
   0xb   : > { %p193_p2 = scmp.eq.s32.totalorder %s516_s5, 3  ;;  %p198_p5 = scmp.ne.s32.totalorder %s689_s24, %s685_s23 }
   0xc   : > { %s915_s8 = smov (%p31_p0, %s30_s8), 0  ;;  %s917_s9 = smov (!%p31_p0, %s33_s9), %s709_s29 }
   0xd   : > { %s178_s10 = ssub.s32 %s705_s28, %s915_s8  ;;  %p808_p3 = por %p193_p2, %p192_p1 }
   0xe   : > { %p35_p4 = scmp.ge.s32.totalorder %s917_s9, 2  ;;  %p199_p6 = scmp.eq.s32.totalorder %s517_s7, 3 }
   0xf   : > { %p520_p7 = scmp.ge.s32.totalorder %s713_s30, 1  ;;  %p251_p9 = scmp.lt.s32.totalorder %s713_s30, 5 }
  0x10   : > { %s919_s9 = smov (%p35_p4, %s917_s9), 0  ;;  %p817_p8 = por %p199_p6, %p198_p5 }
  0x11   : > { %903 = sst [smem:[#allocation7_spill]] %s919_s9  ;;  %s177_s13 = ssub.s32 %s709_s29, %s919_s9 }
  0x12   : > { %s182_s14 = sadd.s32 1, %s693_s25  ;;  %s179_s15 = sor.u32 %s178_s10, %s177_s13 }
  0x13   : > { %p252_p10 = pnand %p520_p7, %p251_p9  ;;  %p180_p11 = scmp.eq.s32.totalorder %s179_s15, 0 }
  0x14   : > { %p292_p12 = scmp.lt.s32.totalorder (!%p252_p10), %s701_s27, 1  ;;  %p294_p13 = scmp.lt.s32.totalorder (!%p252_p10), %s697_s26, 1 }
  0x15   : > { %s826_s16 = scalar_select %p180_p11, %s693_s25, %s182_s14  }
  0x16   : > { %255 = sbr.rel (%p252_p10) target bundleno = 309 (0x135), region = 44  ;;  %s905_s3 = sld [smem:[#allocation8_spill]] (!%p252_p10) }
  0x1b   : > { %v715_v1 = vmov 0.0   ;;  %vm716_vm0 = vmmov 0   ;;  %s293_s19 = scalar_select %p292_p12, %s701_s27, 1  ;;  %v717_v3 = vmov 0   ;;  %v385_v4 = vld [vmem:[#allocation3] sm:$0x1]  ;;  %v391_v18 = vlaneseq }
  0x1c   : > { %535 = vmatprep.subr.bf16.mxu0 %v715_v1  ;;  %537 = vmatprep.mubr.msk.bf16.mxu0 %vm716_vm0, %v715_v1  ;;  %v317_v2 = vld [vmem:[%s905_s3] sm:$0xff]  ;;  %s295_s20 = scalar_select %p294_p13, %s697_s26, 1  ;;  %vm327_vm1 = vcmask 1044480   ;;  %vm323_vm2 = vcmask 80896  }
  0x1d   : > { %615 = vset.pattern.permute.xlu0 %v717_v3  ;;  %616 = vset.pattern.permute.xlu1 %v717_v3  ;;  %s522_s21 = sshll.u32 %s293_s19, 1  ;;  %v372_v5 = vld [vmem:[%s897_s4] sm:$0xff]  ;;  %v392_v24 = vshrl.u32 %v391_v18, 7  ;;  %s289_s3 = sand.u32 1, %s689_s24  }
  0x1e   : > { %320 = vperm.xlu0 %615, %v317_v2   ;;  %388 = vperm.xlu1 %616, %v385_v4   ;;  %s297_s7 = sadd.s32 %s522_s21, %s295_s20  ;;  %v316_v12 = vld [vmem:[%s895_s2] sm:$0xf]  ;;  %s529_s21 = sshll.u32 %s701_s27, 1 }
  0x1f   : > { %s523_s10 = sshll.u32 %s297_s7, 2  ;;  %s525_s13 = sshll.u32 %s297_s7, 3  ;;  %v393_v27 = vsub.s32 0, %v392_v24 }
  0x20   : > { %s299_s17 = scalar_lea.vmem %s893_s0, %s523_s10  ;;  %s307_s9 = scalar_lea.vmem %s894_s1, %s525_s13 }
  0x21   : > { %v309_v6 = vld [vmem:[%s299_s17] sm:$0xf]  ;;  %s416_s22 = sadd.s32 %s697_s26, %s529_s21  ;;  %s405_s17 = scalar_lea.sflag [#allocation5], %s289_s3 }
  0x22   : > { %375 = vperm.xlu0 %615, %v372_v5   ;;  %v310_v7 = vld [vmem:[%s307_s9] sm:$0x3f]  ;;  %311 = vst [vmem:[#allocation2] sm:$0xf] %v309_v6  ;;  %s521_s9 = sshll.u32 %s289_s3, 2  ;;  %s530_s5 = sshll.u32 %s416_s22, 6 }
  0x23   : > { %312 = vst [vmem:[#allocation2 + $0x4] sm:$0x3f] %v310_v7  ;;  %s291_s7 = scalar_lea.vmem [#allocation4], %s521_s9  ;;  %s418_s15 = scalar_lea.hbm %s899_s6, %s530_s5 }
  0x24   : > { %s420_s10 = sshll.u32 %s291_s7, 4  ;;  %s718_s19 = smov [#allocation4]   ;;  %s421_s10 = int_to_ptr.vmem [resolvable:$true] %s420_s10 }
  0x25   : > { %s621_s18 = scalar_lea.vmem %s421_s10, 64  ;;  %s625_s27 = sshll.u32 %s718_s19, 4  ;;  %s626_s27 = int_to_ptr.vmem [resolvable:$false] %s625_s27 }
  0x26   : > { %p622_p0 = scmp.ne.s32.totalorder %s421_s10, %s621_s18  ;;  %s627_s26 = scalar_lea.vmem %s626_s27, 128 }
  0x27   : > { %p628_p4 = scmp.lt.s32.totalorder %s421_s10, %s626_s27  ;;  %p629_p5 = scmp.lt.s32.totalorder %s627_s26, %s621_s18 }
  0x28   : > { %p623_p1 = pnand %p622_p0, %p808_p3 }
  0x29   : > { %p630_p6 = por %p629_p5, %p628_p4 }
  0x2a   : > { %v313_v8 = vld [vmem:[#allocation2] sm:$0xff]  ;;  %v314_v9 = vld [vmem:[#allocation2 + $0x8] sm:$0x3]  ;;  %p624_p2 = pneg %p623_p1 }
  0x2b   : > { %v315_v10 = vpack.c.bf16 %v314_v9, %v313_v8 }
  0x2c   : > { %p631_p7 = pnand %p630_p6, %p624_p2 }
  0x2d   : > { %v329_v11 = vsel %vm327_vm1, %v315_v10, 0 }
  0x2e   : > { %536 = vmatpush3.bf16.msra.mxu0 %v329_v11 }
  0x31   : > { %538 = vmatmul.mubr.msk.bf16.vlgmr.msra.gmra.mxu0 %vm323_vm2, %v316_v12 }
  0x99   : > { %v321_v13 = vpop.permute.xlu0 %320  ;;  %v389_v28 = vpop.permute.xlu1 %388 }
  0x9a   : > { %v394_v31 = vrot.slane %v389_v28, %v393_v27 }
  0x9d   : > { %v376_v19 = vpop.permute.xlu0 %375 }
  0xf1   : > { %v365_v14 = vpop.f32.mrf.mxu0 }
  0xf2   : > { %v366_v15 = vadd.f32 %v365_v14, %v321_v13 }
  0xf3   : > { %v539_v16 = vpop.f32.mrf.mxu0 }
  0xf4   : > { %v371_v17 = vmax.f32 %v366_v15, 0.0 }
  0xf5   : > { %v368_v20 = vpop.f32.mrf.mxu0 }
  0xf6   : > { %v378_v21 = vmul.f32 %v376_v19, %v371_v17 }
  0xf7   : > { %v540_v22 = vpop.f32.mrf.mxu0 }
  0xf8   : > { %v379_v23 = vrot.slane %v378_v21, 4 }
  0xfa   : > { %v380_v25 = vadd.f32 %v379_v23, %v378_v21 }
  0xfc   : > { %v381_v26 = vrot.slane %v380_v25, 2 }
  0xfe   : > { %v382_v29 = vadd.f32 %v381_v26, %v380_v25 }
 0x100   : > { %v383_v30 = vrot.slane %v382_v29, 1 }
 0x102   : > { %v384_v32 = vadd.f32 %v383_v30, %v382_v29 }
 0x104   : > { %v395_v33 = vadd.f32 %v394_v31, %v384_v32 }
 0x106   : > { %v527_v34 = vmul.f32 -1.442695, %v395_v33 }
 0x108   : > { %617 = vpow2.f32 %v527_v34 }
 0x115   : > { %v618_v35 = vpop.eup %617 }
 0x116   : > { %v399_v36 = vadd.f32 1.0, %v618_v35 }
 0x118   : > { %619 = vrcp.f32 %v399_v36 }
 0x125   : > { %v620_v37 = vpop.eup %619 }
 0x126   : > { %v402_v38 = vmul.f32 %v620_v37, %v309_v6 }
 0x128   : > { %403 = vst [vmem:[%s291_s7] sm:$0xf] %v402_v38 }
 0x129   : > { %634 = shalt.err (!%p631_p7)
}
 0x12a   : > { %s635_s20 = scalar_lea.hbm %s418_s15, 64  ;;  %s639_s21 = scalar_lea.hbm %s899_s6, 256 }
 0x12b   : > { %p636_p9 = scmp.ne.s32.totalorder %s418_s15, %s635_s20  ;;  %p640_p12 = scmp.lt.s32.totalorder %s418_s15, %s899_s6 }
 0x12c   : > { %p641_p13 = scmp.lt.s32.totalorder %s639_s21, %s635_s20 }
 0x12d   : > { %p637_p10 = pnand %p636_p9, %p808_p3 }
 0x12e   : > { %p642_p0 = por %p641_p13, %p640_p12 }
 0x12f   : > { %p638_p11 = pneg %p637_p10 }
 0x131   : > { %p643_p1 = pnand %p642_p0, %p638_p11 }
 0x133   : > { %646 = shalt.err (!%p643_p1)
}
 0x134   : > { %541 = dma.vmem_to_hbm [thread:$0]  (%p808_p3), %s421_s10, 64, %s418_s15, %s405_s17  }
 0x135 PF: > { %p547_p2 = scmp.ge.s32.totalorder %s713_s30, 2  ;;  %s432_s7 = sand.u32 1, %s685_s23  }
 0x136   : > { %s433_s13 = scalar_lea.sflag [#allocation5], %s432_s7 }
 0x137   : > { %p544_p4 = pnand %p547_p2, %p817_p8 }
 0x139   : > { %p545_p5 = pneg %p544_p4 }
 0x13b   : > { %680 = dma.done.wait (%p545_p5), %s433_s13, 64  }
 0x13c   : > { %682 = vsyncadd (%p545_p5), %s433_s13, 4294967232  ;;  %s21_s30 = sadd.s32 1, %s713_s30   ;;  %s906_s11 = sld [smem:[#allocation7_spill]] }
 0x13d   : > { %p18_p6 = scmp.ge.s32.totalorder %s21_s30, 6   ;;  %s907_s23 = smov %s689_s24 }
 0x13e   : > { %s908_s24 = smov %s693_s25  ;;  %s909_s25 = smov %s826_s16 }
 0x13f   : > { %s910_s26 = smov %s705_s28  ;;  %s911_s27 = smov %s709_s29 }
 0x140   : > { %s912_s28 = smov %s915_s8  ;;  %20 = sbr.rel (!%p18_p6) target bundleno = 8 (0x8), region = 82 }
 0x142   : > { %s913_s29 = smov %s906_s11 }
 0x145   :  { %438 = vsyncpa [#allocation5], 1 }
 0x146   :  { %440 = vsyncpa [#allocation5 + $0x1], 1 }

</bundles_post_ra>
